<compile_context>
chip_gen: v7x
topology: tpu7x:2x2x1
jax: 0.10.0
libtpu: 0.0.40
codegen_flags: <defaults>
</compile_context>

<pallas_src>
import jax
import jax.numpy as jnp
from jax.experimental import pallas as pl
from jax.experimental.pallas import tpu as pltpu


def _round_up(x, m):
    return (x + m - 1) // m * m


def _sublane_pack(itemsize):
    # Sub-32-bit dtypes pack along sublanes: 8 rows/f32, 16/bf16, 32/int8-fp8.
    return {4: 8, 2: 16, 1: 32}.get(itemsize, 8)


def _vmem_budget_bytes():
    # ~96 MiB on v5e/v6e (128 MiB physical), ~48 MiB on v7x (64 MiB physical).
    try:
        cap = pltpu.get_tpu_info().vmem_capacity_bytes
    except Exception:
        cap = 64 * 1024 * 1024  # conservative (v7x-sized) fallback
    return min(int(0.75 * cap), 100 * 1024 * 1024)


def _estimate_vmem_bytes(tm, tn, d, cols, in_bytes, out_bytes):
    act = 2 * 2 * tm * d * in_bytes          # out_a + out_x row tiles, double-buffered
    w_bufs = 1 if cols == 1 else 2           # resident (Buffered(1)) vs streamed columns
    wgt = 2 * w_bufs * d * tn * in_bytes     # two weight halves
    out = 2 * tm * tn * out_bytes            # output tile, double-buffered
    return act + wgt + out


def linkx_kernel(a_ref, x_ref, wa_ref, wx_ref, o_ref):
    # Pure MXU work: the residual adds are pre-folded into the weights (W + I).
    acc = jnp.dot(a_ref[...], wa_ref[...], preferred_element_type=jnp.float32)
    acc = acc + jnp.dot(x_ref[...], wx_ref[...], preferred_element_type=jnp.float32)
    o_ref[...] = acc.astype(o_ref.dtype)


def linkx_forward(out_x, out_a, weights, *, tm=None, tn=None):
    """LINKX layer forward.  out_x, out_a: (N, D); weights: (2*D, D)."""
    N, D = out_x.shape
    assert out_a.shape == (N, D)
    assert weights.shape == (2 * D, D)

    in_bytes = jnp.dtype(out_x.dtype).itemsize
    out_bytes = in_bytes
    pack = _sublane_pack(in_bytes)
    budget = _vmem_budget_bytes()

    # ---- column tile TN: full-width (resident weights) unless the D x D weight
    # halves would not fit the VMEM budget, in which case stream (D, TN) blocks.
    if tn is not None:
        TN = tn if tn == D else _round_up(tn, 128)
        TN = min(TN, _round_up(D, 128))
        cols = 1 if TN >= D else pl.cdiv(D, TN)
        if cols == 1:
            TN = D
    elif D <= 256 or _estimate_vmem_bytes(pack, D, D, 1, in_bytes, out_bytes) <= budget:
        TN, cols = D, 1
    else:
        TN = 256
        if _estimate_vmem_bytes(pack, TN, D, 2, in_bytes, out_bytes) > budget:
            TN = 128  # TODO(synk): D this large (~20k+) would also need K-tiling.
        cols = pl.cdiv(D, TN)

    # ---- row tile TM: grow (doubling) to fill the VMEM budget; dtype-aware
    # sublane rounding; no HBM padding -- the ragged last block is masked.
    cap = max(pack, min(_round_up(N, pack), 2048))
    if tm is not None:
        TM = max(pack, _round_up(tm, pack))
        while TM > pack and _estimate_vmem_bytes(TM, TN, D, cols, in_bytes, out_bytes) > budget:
            TM = _round_up(TM // 2, pack)
    else:
        TM = pack
        while TM < cap:
            nxt = min(TM * 2, cap)
            if _estimate_vmem_bytes(nxt, TN, D, cols, in_bytes, out_bytes) > budget:
                break
            TM = nxt

    grid = (pl.cdiv(N, TM), cols)

    # ---- residual fold:  concat @ W + x + a  ==  a @ (W_a + I) + x @ (W_x + I)
    eye = jnp.eye(D, dtype=weights.dtype)
    w_a = weights[:D, :] + eye
    w_x = weights[D:, :] + eye

    def make_w_spec():
        if cols == 1:
            # Constant index map + single buffer: weight half stays VMEM-resident.
            return pl.BlockSpec((D, TN), lambda i, j: (0, 0),
                                pipeline_mode=pl.Buffered(1))
        return pl.BlockSpec((D, TN), lambda i, j: (0, j))

    cost = pl.CostEstimate(
        flops=4 * N * D * D,
        bytes_accessed=(3 * N * D + 2 * D * D) * in_bytes,
        transcendentals=0,
    )

    return pl.pallas_call(
        linkx_kernel,
        out_shape=jax.ShapeDtypeStruct((N, D), out_x.dtype),
        grid=grid,
        in_specs=[
            pl.BlockSpec((TM, D), lambda i, j: (i, 0)),   # out_a row tile
            pl.BlockSpec((TM, D), lambda i, j: (i, 0)),   # out_x row tile
            make_w_spec(),                                # W_a + I
            make_w_spec(),                                # W_x + I
        ],
        out_specs=pl.BlockSpec((TM, TN), lambda i, j: (i, j)),
        compiler_params=pltpu.CompilerParams(
            dimension_semantics=("parallel", "parallel"),
            vmem_limit_bytes=budget,
        ),
        cost_estimate=cost,
    )(out_a, out_x, w_a, w_x)


def init_linkx_params(key, dim, dtype=jnp.float32):
    # Xavier/Glorot normal for a (2*dim, dim) matrix: std = sqrt(2 / (3*dim)).
    std = (2.0 / (3 * dim)) ** 0.5
    return std * jax.random.normal(key, (2 * dim, dim), dtype=dtype)


def _reference(out_x, out_a, weights):
    return jnp.concatenate([out_a, out_x], axis=1) @ weights + out_x + out_a


if __name__ == "__main__":
    keys = jax.random.split(jax.random.PRNGKey(0), 9)

    # 1) Small shapes consistent with the module (8 rows, hidden dim = 32).
    N, dim = 8, 32
    w = init_linkx_params(keys[0], dim)
    x = jax.random.normal(keys[1], (N, dim), dtype=jnp.float32)
    a = jax.random.normal(keys[2], (N, dim), dtype=jnp.float32)
    out = linkx_forward(x, a, w)
    jax.block_until_ready(out)
    assert out.shape == (N, dim)
    assert jnp.allclose(out, _reference(x, a, w), atol=1e-4, rtol=1e-4)

    # 2) Ragged row blocks + non-128-multiple feature dim (no HBM pad/slice).
    N2, dim2 = 300, 96
    w2 = init_linkx_params(keys[3], dim2)
    x2 = jax.random.normal(keys[4], (N2, dim2), dtype=jnp.float32)
    a2 = jax.random.normal(keys[5], (N2, dim2), dtype=jnp.float32)
    out2 = linkx_forward(x2, a2, w2, tm=128)
    jax.block_until_ready(out2)
    assert out2.shape == (N2, dim2)
    assert jnp.allclose(out2, _reference(x2, a2, w2), atol=1e-4, rtol=1e-4)

    # 3) Exercise the streaming-weight (column-tiled) path used for very large D.
    N3, dim3 = 64, 256
    w3 = init_linkx_params(keys[6], dim3)
    x3 = jax.random.normal(keys[7], (N3, dim3), dtype=jnp.float32)
    a3 = jax.random.normal(keys[8], (N3, dim3), dtype=jnp.float32)
    out3 = linkx_forward(x3, a3, w3, tm=64, tn=128)
    jax.block_until_ready(out3)
    assert out3.shape == (N3, dim3)
    assert jnp.allclose(out3, _reference(x3, a3, w3), atol=1e-4, rtol=1e-4)

    print("KERNEL_OK")
</pallas_src>

<mosaic_0001>
module attributes {stable_mosaic.version = 11 : i64} {
  func.func @linkx_kernel(%arg0: i32, %arg1: i32, %arg2: memref<8x32xf32, #tpu.memory_space<vmem>>, %arg3: memref<8x32xf32, #tpu.memory_space<vmem>>, %arg4: memref<32x32xf32, #tpu.memory_space<vmem>>, %arg5: memref<32x32xf32, #tpu.memory_space<vmem>>, %arg6: memref<8x32xf32, #tpu.memory_space<vmem>>) attributes {dimension_semantics = [#tpu.dimension_semantics<parallel>, #tpu.dimension_semantics<parallel>], iteration_bounds = array<i64: 1, 1>, scalar_prefetch = 0 : i64, scratch_operands = 0 : i64, tpu.core_type = #tpu.core_type<tc>, window_params = [{transform_indices = @transform_0, window_bounds = array<i64: 8, 32>}, {transform_indices = @transform_1, window_bounds = array<i64: 8, 32>}, {pipeline_mode = #tpu.pipeline_mode<synchronous>, transform_indices = @transform_2, window_bounds = array<i64: 32, 32>}, {pipeline_mode = #tpu.pipeline_mode<synchronous>, transform_indices = @transform_3, window_bounds = array<i64: 32, 32>}, {transform_indices = @transform_4, window_bounds = array<i64: 8, 32>}]} {
    %c0 = arith.constant 0 : index
    %c0_0 = arith.constant 0 : index
    %0 = vector.load %arg2[%c0, %c0_0] : memref<8x32xf32, #tpu.memory_space<vmem>>, vector<8x32xf32>
    %c0_1 = arith.constant 0 : index
    %c0_2 = arith.constant 0 : index
    %1 = vector.load %arg4[%c0_1, %c0_2] : memref<32x32xf32, #tpu.memory_space<vmem>>, vector<32x32xf32>
    %cst = arith.constant dense<0.000000e+00> : vector<8x32xf32>
    %2 = tpu.matmul %0, %1, %cst {dimension_numbers = #tpu.dot_dimension_numbers<[1], [0], [0], [1], [0, 0, 1, 1], [], []>} : vector<8x32xf32>, vector<32x32xf32>, vector<8x32xf32> -> vector<8x32xf32>
    %c0_3 = arith.constant 0 : index
    %c0_4 = arith.constant 0 : index
    %3 = vector.load %arg3[%c0_3, %c0_4] : memref<8x32xf32, #tpu.memory_space<vmem>>, vector<8x32xf32>
    %c0_5 = arith.constant 0 : index
    %c0_6 = arith.constant 0 : index
    %4 = vector.load %arg5[%c0_5, %c0_6] : memref<32x32xf32, #tpu.memory_space<vmem>>, vector<32x32xf32>
    %cst_7 = arith.constant dense<0.000000e+00> : vector<8x32xf32>
    %5 = tpu.matmul %3, %4, %cst_7 {dimension_numbers = #tpu.dot_dimension_numbers<[1], [0], [0], [1], [0, 0, 1, 1], [], []>} : vector<8x32xf32>, vector<32x32xf32>, vector<8x32xf32> -> vector<8x32xf32>
    %6 = arith.addf %2, %5 : vector<8x32xf32>
    %c0_8 = arith.constant 0 : index
    %c0_9 = arith.constant 0 : index
    %7 = vector.load %arg6[%c0_8, %c0_9] : memref<8x32xf32, #tpu.memory_space<vmem>>, vector<8x32xf32>
    tpu.vector_store %arg6[%c0_8, %c0_9], %6 {strides = array<i32>} : memref<8x32xf32, #tpu.memory_space<vmem>>, vector<8x32xf32>,
    return
  }
  func.func @transform_0(%arg0: i32, %arg1: i32) -> (i32, i32) {
    %c0_i32 = arith.constant 0 : i32
    %c0_i32_0 = arith.constant 0 : i32
    return %arg0, %c0_i32 : i32, i32
  }
  func.func @transform_1(%arg0: i32, %arg1: i32) -> (i32, i32) {
    %c0_i32 = arith.constant 0 : i32
    %c0_i32_0 = arith.constant 0 : i32
    return %arg0, %c0_i32 : i32, i32
  }
  func.func @transform_2(%arg0: i32, %arg1: i32) -> (i32, i32) {
    %c0_i32 = arith.constant 0 : i32
    %c0_i32_0 = arith.constant 0 : i32
    %c0_i32_1 = arith.constant 0 : i32
    return %c0_i32, %c0_i32_0 : i32, i32
  }
  func.func @transform_3(%arg0: i32, %arg1: i32) -> (i32, i32) {
    %c0_i32 = arith.constant 0 : i32
    %c0_i32_0 = arith.constant 0 : i32
    %c0_i32_1 = arith.constant 0 : i32
    return %c0_i32, %c0_i32_0 : i32, i32
  }
  func.func @transform_4(%arg0: i32, %arg1: i32) -> (i32, i32) {
    %c0_i32 = arith.constant 0 : i32
    return %arg0, %arg1 : i32, i32
  }
}

</mosaic_0001>

<bundles_post_ra>
// kernel: tpu_custom_call.1
= control target key start
LH: loop header
LB: loop body
LE: loop exit
PB: predicated region body
PF: predicated region fallthrough
CT: control target
= control target key end

     0   :  { %9 = vsyncpa [#allocation3], 0  ;;  %s514_s0 = inlined_call_operand.hbm [shape: f32[8,32], index: 0, kind: input, shape index: {}]   ;;  %s515_s1 = inlined_call_operand.hbm [shape: f32[8,32], index: 1, kind: input, shape index: {}]   ;;  %s516_s2 = inlined_call_operand.hbm [shape: f32[32,32], index: 2, kind: input, shape index: {}]   ;;  %s517_s3 = inlined_call_operand.hbm [shape: f32[32,32], index: 3, kind: input, shape index: {}]   ;;  %s518_s4 = inlined_call_operand.hbm [shape: f32[8,32], index: 4, kind: output, shape index: {}]  }
   0x1   :  { %10 = vsyncpa [#allocation6], 0 }
   0x2   :  { %11 = vsyncpa [#allocation9], 0 }
   0x3   :  { %12 = vsyncpa [#allocation4], 0  ;;  %s419_s15 = smov [#allocation5]   ;;  %s420_s17 = smov [#allocation2]  }
   0x4   :  { %s29_s16 = sshll.u32 %s419_s15, 4  ;;  %s19_s18 = sshll.u32 %s420_s17, 4  ;;  %s30_s16 = int_to_ptr.vmem [resolvable:$true] %s29_s16  ;;  %s20_s18 = int_to_ptr.vmem [resolvable:$true] %s19_s18 }
   0x5   :  { %s301_s21 = scalar_lea.hbm %s515_s1, 128 }
   0x6   :  { %p302_p0 = scmp.ne.s32.totalorder %s515_s1, %s301_s21  ;;  %p305_p1 = scmp.lt.u32.totalorder %s301_s21, %s515_s1 }
   0x8   :  { %p307_p2 = pnand %p305_p1, %p302_p0 }
   0xa   :  { %310 = shalt.err (!%p307_p2)
}
   0xb   :  { %s311_s26 = scalar_lea.vmem %s30_s16, 128  ;;  %p316_p4 = scmp.lt.s32.totalorder %s30_s16, %s30_s16 }
   0xc   :  { %p312_p3 = scmp.ne.s32.totalorder %s30_s16, %s311_s26  ;;  %p317_p5 = scmp.lt.s32.totalorder %s311_s26, %s311_s26 }
   0xe   :  { %p318_p6 = por %p317_p5, %p316_p4 }
  0x10   :  { %p319_p7 = pnand %p318_p6, %p312_p3 }
  0x12   :  { %322 = shalt.err (!%p319_p7)
}
  0x13   :  { %32 = dma.hbm_to_vmem [thread:$0]  %s515_s1, 128, %s30_s16, [#allocation6]  }
  0x14   :  { %s323_s5 = scalar_lea.hbm %s514_s0, 128 }
  0x15   :  { %p324_p8 = scmp.ne.s32.totalorder %s514_s0, %s323_s5  ;;  %p327_p9 = scmp.lt.u32.totalorder %s323_s5, %s514_s0 }
  0x17   :  { %p329_p10 = pnand %p327_p9, %p324_p8 }
  0x19   :  { %332 = shalt.err (!%p329_p10)
}
  0x1a   :  { %s333_s10 = scalar_lea.vmem %s20_s18, 128  ;;  %p338_p12 = scmp.lt.s32.totalorder %s20_s18, %s20_s18 }
  0x1b   :  { %p334_p11 = scmp.ne.s32.totalorder %s20_s18, %s333_s10  ;;  %p339_p13 = scmp.lt.s32.totalorder %s333_s10, %s333_s10 }
  0x1d   :  { %p340_p0 = por %p339_p13, %p338_p12 }
  0x1f   :  { %p341_p1 = pnand %p340_p0, %p334_p11 }
  0x21   :  { %344 = shalt.err (!%p341_p1)
}
  0x22   :  { %22 = dma.hbm_to_vmem [thread:$0]  %s514_s0, 128, %s20_s18, [#allocation3]  }
  0x23   :  { %s421_s12 = smov [#allocation7]   ;;  %s345_s16 = scalar_lea.hbm %s516_s2, 512 }
  0x24   :  { %s38_s13 = sshll.u32 %s421_s12, 4  ;;  %p346_p2 = scmp.ne.s32.totalorder %s516_s2, %s345_s16  ;;  %s39_s13 = int_to_ptr.vmem [resolvable:$true] %s38_s13 }
  0x25   :  { %p349_p3 = scmp.lt.u32.totalorder %s345_s16, %s516_s2 }
  0x27   :  { %p351_p4 = pnand %p349_p3, %p346_p2 }
  0x29   :  { %354 = shalt.err (!%p351_p4)
}
  0x2a   :  { %s355_s22 = scalar_lea.vmem %s39_s13, 512  ;;  %p360_p6 = scmp.lt.s32.totalorder %s39_s13, %s39_s13 }
  0x2b   :  { %p356_p5 = scmp.ne.s32.totalorder %s39_s13, %s355_s22  ;;  %p361_p7 = scmp.lt.s32.totalorder %s355_s22, %s355_s22 }
  0x2d   :  { %p362_p8 = por %p361_p7, %p360_p6 }
  0x2f   :  { %p363_p9 = pnand %p362_p8, %p356_p5 }
  0x31   :  { %366 = shalt.err (!%p363_p9)
}
  0x32   :  { %s422_s0 = smov 128   ;;  %s423_s18 = smov 8  }
  0x33   :  { %44 = dma.hbm_to_vmem [thread:$0]  %s516_s2, 512, %s39_s13, [#allocation6], %s422_s0, %s422_s0, %s423_s18  }
  0x34   :  { %s424_s25 = smov [#allocation8]   ;;  %s367_s29 = scalar_lea.hbm %s517_s3, 512 }
  0x35   :  { %s50_s26 = sshll.u32 %s424_s25, 4  ;;  %p368_p10 = scmp.ne.s32.totalorder %s517_s3, %s367_s29  ;;  %s51_s26 = int_to_ptr.vmem [resolvable:$true] %s50_s26 }
  0x36   :  { %p371_p11 = scmp.lt.u32.totalorder %s367_s29, %s517_s3 }
  0x38   :  { %p373_p12 = pnand %p371_p11, %p368_p10 }
  0x3a   :  { %376 = shalt.err (!%p373_p12)
}
  0x3b   :  { %s377_s8 = scalar_lea.vmem %s51_s26, 512  ;;  %p382_p0 = scmp.lt.s32.totalorder %s51_s26, %s51_s26 }
  0x3c   :  { %p378_p13 = scmp.ne.s32.totalorder %s51_s26, %s377_s8  ;;  %p383_p1 = scmp.lt.s32.totalorder %s377_s8, %s377_s8 }
  0x3e   :  { %p384_p2 = por %p383_p1, %p382_p0 }
  0x40   :  { %p385_p3 = pnand %p384_p2, %p378_p13 }
  0x42   :  { %388 = shalt.err (!%p385_p3)
}
  0x43   :  { %56 = dma.hbm_to_vmem [thread:$0]  %s517_s3, 512, %s51_s26, [#allocation9], %s422_s0, %s422_s0, %s423_s18  }
  0x44   :  { %411 = dma.done.wait [#allocation3], 128  }
  0x45   :  { %412 = vsyncadd [#allocation3], 4294967168 }
  0x46   :  { %413 = dma.done.wait [#allocation6], 640  }
  0x47   :  { %414 = vsyncadd [#allocation6], 4294966656 }
  0x48   :  { %415 = dma.done.wait [#allocation9], 512  }
  0x49   :  { %416 = vsyncadd [#allocation9], 4294966784  ;;  %v425_v0 = vmov 0.0|0.0   ;;  %vm426_vm0 = vmmov 0   ;;  %v427_v1 = vmov 0.0   ;;  %v75_v2 = vld [vmem:[#allocation8] sm:$0xff] }
  0x4a   :  { %278 = vmatprep.subr.bf16.mxu1 %v425_v0  ;;  %284 = vmatprep.subr.bf16.mxu0 %v425_v0  ;;  %v76_v3 = vld [vmem:[#allocation8 + $0x8] sm:$0xff]  ;;  %v70_v4 = vld [vmem:[#allocation7] sm:$0xff]  ;;  %v77_v7 = vld [vmem:[#allocation8 + $0x10] sm:$0xff]  ;;  %vm79_vm1 = vcmask 261120   ;;  %s428_s3 = smov [#allocation10]  }
  0x4b   :  { %264 = vmatprep.mubr.msk.f32.mxu1 %vm426_vm0, %v427_v1  ;;  %275 = vmatprep.mubr.msk.f32.mxu0 %vm426_vm0, %v427_v1  ;;  %v279_v5 = vpack.c.bf16 %v76_v3, %v75_v2  ;;  %v71_v6 = vld [vmem:[#allocation7 + $0x8] sm:$0xff]  ;;  %v78_v8 = vld [vmem:[#allocation8 + $0x18] sm:$0xff]  ;;  %v72_v10 = vld [vmem:[#allocation7 + $0x10] sm:$0xff]  ;;  %s233_s10 = sshll.u32 %s428_s3, 4  ;;  %s234_s10 = int_to_ptr.vmem [resolvable:$true] %s233_s10 }
  0x4c   :  { %v285_v9 = vpack.c.bf16 %v71_v6, %v70_v4  ;;  %v73_v11 = vld [vmem:[#allocation7 + $0x18] sm:$0xff]  ;;  %v282_v12 = vpack.c.bf16 %v78_v8, %v77_v7  ;;  %v69_v15 = vld [vmem:[#allocation2] sm:$0xff]  ;;  %s389_s1 = scalar_lea.vmem %s234_s10, 128  ;;  %p394_p5 = scmp.lt.s32.totalorder %s234_s10, %s234_s10 }
  0x4d   :  { %280 = vmatpush3.bf16.msra.mxu1 %v279_v5  ;;  %v288_v13 = vpack.c.bf16 %v73_v11, %v72_v10  ;;  %v74_v14 = vld [vmem:[#allocation5] sm:$0xff]  ;;  %p390_p4 = scmp.ne.s32.totalorder %s234_s10, %s389_s1  ;;  %p395_p6 = scmp.lt.s32.totalorder %s389_s1, %s389_s1 }
  0x4e   :  { %286 = vmatpush3.bf16.msra.mxu0 %v285_v9  ;;  %281 = vmatprep.subr.bf16.mxu1 %v425_v0 }
  0x4f   :  { %287 = vmatprep.subr.bf16.mxu0 %v425_v0  ;;  %p396_p7 = por %p395_p6, %p394_p5 }
  0x51   :  { %283 = vmatpush3.bf16.msra.mxu1 %v282_v12  ;;  %p397_p8 = pnand %p396_p7, %p390_p4 }
  0x52   :  { %289 = vmatpush3.bf16.msra.mxu0 %v288_v13 }
  0x54   :  { %265 = vmatmul.mubr.msk.f32.vlgmr.msra.gmra.mrb[0].mxu1 %vm79_vm1, %v74_v14 }
  0x55   :  { %276 = vmatmul.mubr.msk.f32.vlgmr.msra.gmra.mrb[0].mxu0 %vm79_vm1, %v69_v15 }
 0x127   :  { %v149_v16 = vpop.f32.mrb[0].mxu1 }
 0x128   :  { %v222_v17 = vpop.f32.mrb[0].mxu0  ;;  %v266_v18 = vpop.f32.mrb[1].mxu1 }
 0x129   :  { %v223_v19 = vadd.f32 %v222_v17, %v149_v16  ;;  %v277_v20 = vpop.f32.mrb[1].mxu0 }
 0x12b   :  { %226 = vst.msk [vmem:[#allocation10] sm:$0xff] %vm79_vm1, %v223_v19 }
 0x12c   :  { %400 = shalt.err (!%p397_p8)
}
 0x12d   :  { %s401_s13 = scalar_lea.hbm %s518_s4, 128 }
 0x12e   :  { %p402_p9 = scmp.ne.s32.totalorder %s518_s4, %s401_s13  ;;  %p405_p10 = scmp.lt.u32.totalorder %s401_s13, %s518_s4 }
 0x130   :  { %p407_p11 = pnand %p405_p10, %p402_p9 }
 0x132   :  { %410 = shalt.err (!%p407_p11)
}
 0x133   :  { %236 = dma.vmem_to_hbm [thread:$0]  %s234_s10, 128, %s518_s4, [#allocation4]  }
 0x134   :  { %417 = dma.done.wait [#allocation4], 128  }
 0x135   :  { %418 = vsyncadd [#allocation4], 4294967168 }
 0x136   :  { %240 = vsyncpa [#allocation3], 1 }
 0x137   :  { %241 = vsyncpa [#allocation6], 1 }
 0x138   :  { %242 = vsyncpa [#allocation9], 1 }
 0x139   :  { %243 = vsyncpa [#allocation4], 1 }

</bundles_post_ra>
